<compile_context>
chip_gen: v7x
topology: tpu7x:2x2x1
jax: 0.10.0
libtpu: 0.0.40
codegen_flags: <defaults>
</compile_context>

<pallas_src>
import functools

import jax
import jax.numpy as jnp
from jax import lax
from jax.experimental import pallas as pl
from jax.experimental.pallas import tpu as pltpu

_LANE = 128      # vreg lane width (last-dim tiling unit)
_SUBLANE = 8     # vreg sublane width (second-last-dim tiling unit)
_TARGET_BLOCK_BYTES = 4 << 20   # ~4 MiB input blocks


# --------------------------------------------------------------------------
# Kernels
# --------------------------------------------------------------------------
def _softmax_dim0_kernel(x_ref, o_ref):
    """Single-pass kernel: the whole reduction axis (dim 0) lives in the block."""
    x_exp = jnp.exp(x_ref[...].astype(jnp.float32))     # EUP
    total = jnp.sum(x_exp, axis=0, keepdims=True)        # XLU column reduce -> (1, cols)
    inv = pl.reciprocal(total, approx=False)              # one reciprocal per column
    o_ref[...] = (x_exp * inv).astype(o_ref.dtype)        # broadcast VPU multiply


def _colsum_exp_kernel(x_ref, sum_ref, *, row_tile, n_rows):
    """Tall-S fallback, pass 1: accumulate per-column sum(exp(x)) over row blocks."""
    r = pl.program_id(1)   # row-block index (inner, "arbitrary" axis)

    @pl.when(r == 0)
    def _init():
        sum_ref[...] = jnp.zeros_like(sum_ref)

    x = x_ref[...].astype(jnp.float32)
    # Mask rows past the end of the array so the ragged last row block's OOB
    # garbage never pollutes the per-column sums.
    row_ids = r * row_tile + lax.broadcasted_iota(jnp.int32, x.shape, 0)
    x_exp = jnp.where(row_ids < n_rows, jnp.exp(x), 0.0)
    sum_ref[...] += jnp.sum(x_exp, axis=0, keepdims=True)


def _normalize_kernel(x_ref, sum_ref, o_ref):
    """Tall-S fallback, pass 2: o = exp(x) * (1 / colsum)."""
    x_exp = jnp.exp(x_ref[...].astype(jnp.float32))
    inv = pl.reciprocal(sum_ref[...], approx=False)
    o_ref[...] = (x_exp * inv).astype(o_ref.dtype)


# --------------------------------------------------------------------------
# Tile / VMEM sizing (one consistent budget for chooser and vmem_limit_bytes)
# --------------------------------------------------------------------------
def _vmem_numbers():
    try:
        cap = int(pltpu.get_tpu_info().vmem_capacity_bytes)
    except Exception:
        cap = 64 << 20  # conservative (v7x-sized) fallback
    vmem_limit = int(min(cap * 3 // 4, 64 << 20))   # 48 MiB on v7x, 64 MiB on v5e/v6e
    block_budget = vmem_limit - (8 << 20)           # headroom for compiler scratch
    return vmem_limit, block_budget


def _footprint_bytes(rows, cols, itemsize):
    # 2x input + 2x output double buffers + ~2 live f32 intermediates.
    return rows * cols * (4 * itemsize + 8)


def _pick_col_tile(S, H, itemsize, block_budget):
    """Largest lane-multiple column tile whose resident footprint fits the budget,
    targeting ~_TARGET_BLOCK_BYTES per input block.  Returns 0 if even a 128-lane
    full-height block is too tall (caller falls back to the row-tiled path)."""
    if H <= _LANE:
        return H if _footprint_bytes(S, H, itemsize) <= block_budget else 0
    bytes_per_col = _footprint_bytes(S, 1, itemsize)
    max_cols = (block_budget // bytes_per_col) // _LANE * _LANE
    if max_cols < _LANE:
        return 0
    target_cols = max(_TARGET_BLOCK_BYTES // (S * itemsize), _LANE) // _LANE * _LANE
    cols = min(max_cols, target_cols)
    return H if cols >= H else cols


def _pick_row_tile(S, col_tile, itemsize, block_budget):
    bytes_per_row = _footprint_bytes(1, col_tile, itemsize)
    max_rows = (block_budget // bytes_per_row) // _SUBLANE * _SUBLANE
    target_rows = max(_TARGET_BLOCK_BYTES // (col_tile * itemsize), _SUBLANE)
    target_rows = target_rows // _SUBLANE * _SUBLANE
    rows = max(_SUBLANE, min(max_rows, target_rows))
    # Never make the row block taller than the array.
    return min(rows, max(_SUBLANE, (S // _SUBLANE) * _SUBLANE))


# --------------------------------------------------------------------------
# Wrappers
# --------------------------------------------------------------------------
def _softmax_single_pass(x, col_tile, vmem_limit):
    S, H = x.shape
    assert col_tile == H or col_tile % _LANE == 0
    grid = (pl.cdiv(H, col_tile),)
    return pl.pallas_call(
        _softmax_dim0_kernel,
        out_shape=jax.ShapeDtypeStruct((S, H), x.dtype),
        grid_spec=pltpu.PrefetchScalarGridSpec(
            num_scalar_prefetch=0,
            grid=grid,
            in_specs=[pl.BlockSpec((S, col_tile), lambda j: (0, j))],
            out_specs=pl.BlockSpec((S, col_tile), lambda j: (0, j)),
        ),
        compiler_params=pltpu.CompilerParams(
            # Columns are embarrassingly parallel; shards across TCs on v7x.
            # (pltpu.CORE_PARALLEL could be evaluated on v7x if profiling shows
            #  one core idle — kept as the portable string here.)
            dimension_semantics=("parallel",),
            vmem_limit_bytes=vmem_limit,
        ),
    )(x)


def _softmax_two_pass(x, col_tile, row_tile, vmem_limit):
    """Row-tiled fallback for reduction axes too tall for a full-height block."""
    S, H = x.shape
    assert col_tile == H or col_tile % _LANE == 0
    assert row_tile == S or row_tile % _SUBLANE == 0
    n_col = pl.cdiv(H, col_tile)
    n_row = pl.cdiv(S, row_tile)

    # Pass 1: per-column sums of exp(x), accumulated across the row axis.
    sums = pl.pallas_call(
        functools.partial(_colsum_exp_kernel, row_tile=row_tile, n_rows=S),
        out_shape=jax.ShapeDtypeStruct((1, H), jnp.float32),
        grid_spec=pltpu.PrefetchScalarGridSpec(
            num_scalar_prefetch=0,
            grid=(n_col, n_row),                       # row axis innermost (reduction)
            in_specs=[pl.BlockSpec((row_tile, col_tile), lambda j, r: (r, j))],
            out_specs=pl.BlockSpec((1, col_tile), lambda j, r: (0, j)),
        ),
        compiler_params=pltpu.CompilerParams(
            dimension_semantics=("parallel", "arbitrary"),
            vmem_limit_bytes=vmem_limit,
        ),
    )(x)

    # Pass 2: normalize every (row, col) block independently.
    return pl.pallas_call(
        _normalize_kernel,
        out_shape=jax.ShapeDtypeStruct((S, H), x.dtype),
        grid_spec=pltpu.PrefetchScalarGridSpec(
            num_scalar_prefetch=0,
            grid=(n_col, n_row),
            in_specs=[
                pl.BlockSpec((row_tile, col_tile), lambda j, r: (r, j)),
                pl.BlockSpec((1, col_tile), lambda j, r: (0, j)),
            ],
            out_specs=pl.BlockSpec((row_tile, col_tile), lambda j, r: (r, j)),
        ),
        compiler_params=pltpu.CompilerParams(
            dimension_semantics=("parallel", "parallel"),
            vmem_limit_bytes=vmem_limit,
        ),
    )(x, sums)


def my_softmax(x, *, col_tile=None, row_tile=None, force_two_pass=False):
    """exp(x) / exp(x).sum(axis=0, keepdims=True)  (PyTorch MySoftmax) in Pallas.

    NOTE: like the reference module there is NO max subtraction, so exp
    overflows exactly as torch.exp does for large inputs.
    """
    S, H = x.shape
    itemsize = jnp.dtype(x.dtype).itemsize
    vmem_limit, block_budget = _vmem_numbers()

    auto_col = _pick_col_tile(S, H, itemsize, block_budget)
    use_two_pass = force_two_pass or (auto_col == 0 and col_tile is None)

    if not use_two_pass:
        ct = col_tile if col_tile is not None else auto_col
        return _softmax_single_pass(x, ct, vmem_limit)

    # Tall-S fallback (or forced for testing): narrow column strip, row-tiled.
    if col_tile is not None:
        ct = col_tile
    elif H <= _LANE:
        ct = H
    else:
        ct = min(512, (H // _LANE) * _LANE)
    rt = row_tile if row_tile is not None else _pick_row_tile(S, ct, itemsize, block_budget)
    return _softmax_two_pass(x, ct, rt, vmem_limit)


def _ref_softmax_dim0(x):
    x_exp = jnp.exp(x)
    return x_exp / jnp.sum(x_exp, axis=0, keepdims=True)


if __name__ == "__main__":
    k0, k1, k2 = jax.random.split(jax.random.PRNGKey(0), 3)

    # 1) Small shape consistent with the module's forward: seq=8, hidden=32.
    #    Single ragged-free block (col_tile == H == 32); overhead-dominated by
    #    nature at 4 KiB of data.
    x_small = jax.random.normal(k0, (8, 32), dtype=jnp.float32)
    out_small = jax.block_until_ready(my_softmax(x_small))
    ref_small = _ref_softmax_dim0(x_small)
    assert out_small.shape == x_small.shape
    assert out_small.dtype == x_small.dtype
    assert jnp.allclose(out_small, ref_small, atol=1e-6, rtol=1e-6)
    assert jnp.allclose(jnp.sum(out_small, axis=0), jnp.ones((32,)), atol=1e-5)

    # 2) Non-multiple-of-128 width with an explicit 256-lane tile: exercises the
    #    pad-free cdiv grid with a ragged last column block (masked stores only
    #    on that block; no wrapper-side pad/slice HBM passes).
    x_mid = jax.random.normal(k1, (64, 1000), dtype=jnp.float32)
    out_mid = jax.block_until_ready(my_softmax(x_mid, col_tile=256))
    ref_mid = _ref_softmax_dim0(x_mid)
    assert jnp.allclose(out_mid, ref_mid, atol=1e-6, rtol=1e-6)
    assert jnp.allclose(jnp.sum(out_mid, axis=0), jnp.ones((1000,)), atol=1e-5)

    # 3) Force the tall-S two-pass fallback on a small shape with ragged row and
    #    column blocks (80 rows / row_tile 32, 200 cols / col_tile 128) to check
    #    the row-masked accumulation + normalize path.
    x_tall = jax.random.normal(k2, (80, 200), dtype=jnp.float32)
    out_tall = jax.block_until_ready(
        my_softmax(x_tall, col_tile=128, row_tile=32, force_two_pass=True))
    ref_tall = _ref_softmax_dim0(x_tall)
    assert jnp.allclose(out_tall, ref_tall, atol=1e-6, rtol=1e-6)
    assert jnp.allclose(jnp.sum(out_tall, axis=0), jnp.ones((200,)), atol=1e-5)

    print("KERNEL_OK")
</pallas_src>

<mosaic_0001>
module attributes {stable_mosaic.version = 11 : i64} {
  func.func @_softmax_dim0_kernel(%arg0: i32, %arg1: memref<8x32xf32, #tpu.memory_space<vmem>>, %arg2: memref<8x32xf32, #tpu.memory_space<vmem>>) attributes {dimension_semantics = [#tpu.dimension_semantics<parallel>], iteration_bounds = array<i64: 1>, scalar_prefetch = 0 : i64, scratch_operands = 0 : i64, tpu.core_type = #tpu.core_type<tc>, window_params = [{transform_indices = @transform_0, window_bounds = array<i64: 8, 32>}, {transform_indices = @transform_1, window_bounds = array<i64: 8, 32>}]} {
    %c0 = arith.constant 0 : index
    %c0_0 = arith.constant 0 : index
    %0 = vector.load %arg1[%c0, %c0_0] : memref<8x32xf32, #tpu.memory_space<vmem>>, vector<8x32xf32>
    %1 = math.exp %0 : vector<8x32xf32>
    %cst = arith.constant dense<0.000000e+00> : vector<32xf32>
    %2 = vector.multi_reduction <add>, %1, %cst [0] : vector<8x32xf32> to vector<32xf32>
    %3 = vector.shape_cast %2 : vector<32xf32> to vector<1x32xf32>
    %4 = tpu.reciprocal %3 : vector<1x32xf32> -> vector<1x32xf32>
    %5 = vector.broadcast %4 : vector<1x32xf32> to vector<8x32xf32>
    %6 = arith.mulf %1, %5 : vector<8x32xf32>
    %c0_1 = arith.constant 0 : index
    %c0_2 = arith.constant 0 : index
    %7 = vector.load %arg2[%c0_1, %c0_2] : memref<8x32xf32, #tpu.memory_space<vmem>>, vector<8x32xf32>
    tpu.vector_store %arg2[%c0_1, %c0_2], %6 {strides = array<i32>} : memref<8x32xf32, #tpu.memory_space<vmem>>, vector<8x32xf32>,
    return
  }
  func.func @transform_0(%arg0: i32) -> (i32, i32) {
    %c0_i32 = arith.constant 0 : i32
    %c0_i32_0 = arith.constant 0 : i32
    return %c0_i32, %arg0 : i32, i32
  }
  func.func @transform_1(%arg0: i32) -> (i32, i32) {
    %c0_i32 = arith.constant 0 : i32
    %c0_i32_0 = arith.constant 0 : i32
    return %c0_i32, %arg0 : i32, i32
  }
}

</mosaic_0001>

<bundles_post_ra>
// kernel: tpu_custom_call.1
= control target key start
LH: loop header
LB: loop body
LE: loop exit
PB: predicated region body
PF: predicated region fallthrough
CT: control target
= control target key end

     0   :  { %6 = vsyncpa [#allocation3], 0  ;;  %s140_s0 = inlined_call_operand.hbm [shape: f32[8,32], index: 0, kind: input, shape index: {}]   ;;  %s141_s1 = inlined_call_operand.hbm [shape: f32[8,32], index: 1, kind: output, shape index: {}]  }
   0x1   :  { %7 = vsyncpa [#allocation4], 0  ;;  %s104_s6 = smov [#allocation2]   ;;  %s56_s10 = scalar_lea.hbm %s140_s0, 128 }
   0x2   :  { %s14_s7 = sshll.u32 %s104_s6, 4  ;;  %p57_p0 = scmp.ne.s32.totalorder %s140_s0, %s56_s10  ;;  %s15_s7 = int_to_ptr.vmem [resolvable:$true] %s14_s7 }
   0x3   :  { %p60_p1 = scmp.lt.u32.totalorder %s56_s10, %s140_s0 }
   0x5   :  { %p62_p2 = pnand %p60_p1, %p57_p0 }
   0x7   :  { %65 = shalt.err (!%p62_p2)
}
   0x8   :  { %s66_s15 = scalar_lea.vmem %s15_s7, 128  ;;  %p71_p4 = scmp.lt.s32.totalorder %s15_s7, %s15_s7 }
   0x9   :  { %p67_p3 = scmp.ne.s32.totalorder %s15_s7, %s66_s15  ;;  %p72_p5 = scmp.lt.s32.totalorder %s66_s15, %s66_s15 }
   0xb   :  { %p73_p6 = por %p72_p5, %p71_p4 }
   0xd   :  { %p74_p7 = pnand %p73_p6, %p67_p3 }
   0xf   :  { %77 = shalt.err (!%p74_p7)
}
  0x10   :  { %17 = dma.hbm_to_vmem [thread:$0]  %s140_s0, 128, %s15_s7, [#allocation3]  }
  0x11   :  { %100 = dma.done.wait [#allocation3], 128  }
  0x12   :  { %101 = vsyncadd [#allocation3], 4294967168  ;;  %v21_v0 = vld [vmem:[#allocation2] sm:$0xff]  ;;  %vm24_vm0 = vcmask 261120   ;;  %s105_s18 = smov [#allocation5]  }
  0x13   :  { %v22_v1 = vmul.f32 1.442695, %v21_v0  ;;  %s41_s19 = sshll.u32 %s105_s18, 4  ;;  %s42_s19 = int_to_ptr.vmem [resolvable:$true] %s41_s19 }
  0x14   :  { %s78_s0 = scalar_lea.vmem %s42_s19, 128  ;;  %p83_p9 = scmp.lt.s32.totalorder %s42_s19, %s42_s19 }
  0x15   :  { %52 = vpow2.f32 %v22_v1  ;;  %p79_p8 = scmp.ne.s32.totalorder %s42_s19, %s78_s0  ;;  %p84_p10 = scmp.lt.s32.totalorder %s78_s0, %s78_s0 }
  0x17   :  { %p85_p11 = por %p84_p10, %p83_p9 }
  0x19   :  { %p86_p12 = pnand %p85_p11, %p79_p8 }
  0x1f   :  { %v53_v2 = vpop.eup %52 }
  0x20   :  { %v25_v3 = vsel %vm24_vm0, %v53_v2, 0.0 }
  0x21   :  { %v26_v4 = vrot.slane %v25_v3, 4 }
  0x23   :  { %v27_v5 = vadd.f32 %v26_v4, %v25_v3 }
  0x25   :  { %v28_v6 = vrot.slane %v27_v5, 2 }
  0x27   :  { %v29_v7 = vadd.f32 %v28_v6, %v27_v5 }
  0x29   :  { %v30_v8 = vrot.slane %v29_v7, 1 }
  0x2b   :  { %v31_v9 = vadd.f32 %v30_v8, %v29_v7 }
  0x2d   :  { %54 = vrcp.f32 %v31_v9 }
  0x37   :  { %v55_v10 = vpop.eup %54 }
  0x38   :  { %v33_v11 = vmul.f32 %v55_v10, %v53_v2 }
  0x3a   :  { %34 = vst.msk [vmem:[#allocation5] sm:$0xff] %vm24_vm0, %v33_v11 }
  0x3b   :  { %89 = shalt.err (!%p86_p12)
}
  0x3c   :  { %s90_s22 = scalar_lea.hbm %s141_s1, 128 }
  0x3d   :  { %p91_p13 = scmp.ne.s32.totalorder %s141_s1, %s90_s22  ;;  %p94_p0 = scmp.lt.u32.totalorder %s90_s22, %s141_s1 }
  0x3f   :  { %p96_p1 = pnand %p94_p0, %p91_p13 }
  0x41   :  { %99 = shalt.err (!%p96_p1)
}
  0x42   :  { %44 = dma.vmem_to_hbm [thread:$0]  %s42_s19, 128, %s141_s1, [#allocation4]  }
  0x43   :  { %102 = dma.done.wait [#allocation4], 128  }
  0x44   :  { %103 = vsyncadd [#allocation4], 4294967168 }
  0x45   :  { %48 = vsyncpa [#allocation3], 1 }
  0x46   :  { %49 = vsyncpa [#allocation4], 1 }

</bundles_post_ra>
